<compile_context>
chip_gen: v7x
topology: tpu7x:2x2x1
jax: 0.10.0
libtpu: 0.0.40
codegen_flags: <defaults>
</compile_context>

<pallas_src>
import functools

import jax
import jax.numpy as jnp
from jax import lax
from jax.experimental import pallas as pl
from jax.experimental.pallas import tpu as pltpu


def _vmem_capacity_bytes():
    """Physical VMEM per TensorCore, with a conservative fallback."""
    try:
        info = pltpu.get_tpu_info()
        for attr in ("vmem_capacity_bytes", "vmem_size_bytes"):
            cap = getattr(info, attr, None)
            if cap:
                return int(cap)
    except Exception:
        pass
    return 64 << 20  # smallest across v5e/v6e/v7x


def _style_loss_kernel(x_ref, t_ref, o_ref, acc_ref, *, m_total, n_rows, tk, ragged):
    """Single-pass gram reduction + in-kernel loss (scalar to SMEM)."""
    k = pl.program_id(0)
    last = pl.num_programs(0) - 1

    @pl.when(k == 0)
    def _():
        acc_ref[...] = jnp.zeros_like(acc_ref)

    def accum(x):
        # Contract axis 1 of x with axis 1 of x (trans_b matmul) on the MXU.
        acc_ref[...] += lax.dot_general(
            x, x,
            dimension_numbers=(((1,), (1,)), ((), ())),
            preferred_element_type=jnp.float32,
        )

    if ragged:
        # Mask the padded columns only on the last (partial) K tile; all other
        # steps take the unmasked fast path.
        @pl.when(k != last)
        def _():
            accum(x_ref[...])

        @pl.when(k == last)
        def _():
            x = x_ref[...]
            col = lax.broadcasted_iota(jnp.int32, x.shape, dimension=1)
            x = jnp.where(k * tk + col < m_total, x, jnp.zeros_like(x))
            accum(x)
    else:
        accum(x_ref[...])

    @pl.when(k == last)
    def _():
        gram = acc_ref[...] * (1.0 / float(m_total))
        diff = gram - t_ref[...].astype(jnp.float32)
        o_ref[0, 0] = jnp.sum(diff * diff) * (1.0 / float(n_rows * n_rows))


def _partial_gram_kernel(x_ref, pg_ref, *, m_total, tk, steps_per_partial,
                         total_steps):
    """K reduction split over a leading 'parallel' axis -> partial grams."""
    p = pl.program_id(0)
    k = pl.program_id(1)
    gs = p * steps_per_partial + k          # global K-step index
    last = total_steps - 1
    ragged = (m_total % tk) != 0

    @pl.when(k == 0)
    def _():
        pg_ref[...] = jnp.zeros_like(pg_ref)

    def accum(x):
        pg_ref[...] += lax.dot_general(
            x, x,
            dimension_numbers=(((1,), (1,)), ((), ())),
            preferred_element_type=jnp.float32,
        )

    if ragged:
        @pl.when(gs < last)
        def _():
            accum(x_ref[...])

        @pl.when(gs == last)
        def _():
            x = x_ref[...]
            col = lax.broadcasted_iota(jnp.int32, x.shape, dimension=1)
            x = jnp.where(gs * tk + col < m_total, x, jnp.zeros_like(x))
            accum(x)
    else:
        @pl.when(gs < total_steps)
        def _():
            accum(x_ref[...])
    # Overhang steps (gs >= total_steps) contribute nothing.


def style_loss(input_feature, target_feature, *, tk=None, num_partials=1,
               tile_bytes_target=4 << 20):
    """input_feature: [N, M], target_feature: [N, N] -> scalar float32 loss.

    tk: K-tile width (columns streamed per step). If None it is sized to
        ~tile_bytes_target per streamed buffer, bounded by the VMEM budget.
    num_partials: >1 splits the K reduction along a leading 'parallel' grid
        axis (partial grams combined in a tiny JAX epilogue).
    NOTE: pass bf16 input from the producer (not via a wrapper cast) to halve
    streamed HBM bytes; accumulation stays f32.
    """
    N, M = input_feature.shape
    assert target_feature.shape == (N, N)

    xb = jnp.dtype(input_feature.dtype).itemsize
    tb = jnp.dtype(target_feature.dtype).itemsize

    cap = _vmem_capacity_bytes()
    # Generation-aware streaming budget (~60% of physical VMEM, capped).
    budget = max(24 << 20, min(int(cap * 0.6), 96 << 20))

    # Resident VMEM besides the streamed X tiles: target block (2 pipeline
    # buffers) + f32 gram accumulator / partial-gram output block (2 buffers).
    fixed_bytes = 2 * N * N * tb + 2 * N * N * 4

    m_padded = max(128, pl.cdiv(M, 128) * 128)

    # Largest tk the VMEM budget allows (X is double-buffered).
    tk_vmem = max(budget - fixed_bytes, 2 * N * 128 * xb) // (2 * N * xb) // 128 * 128
    # Bytes-based tile target (replaces the old fixed 2048-column cap).
    tk_bytes = max(128, tile_bytes_target // (N * xb) // 128 * 128)
    if tk is None:
        tk = tk_bytes
    tk = int(max(128, min(tk, tk_vmem, m_padded)))

    grid_k = pl.cdiv(M, tk)
    ragged = (M % tk) != 0

    need = 2 * N * tk * xb + fixed_bytes
    if need > cap - (16 << 20):
        raise ValueError(
            f"StyleLoss tiling needs ~{need >> 20} MiB VMEM but this TPU "
            f"generation exposes only {cap >> 20} MiB; reduce N or tk.")
    vmem_limit = int(min(max(need + (8 << 20), 16 << 20), cap - (16 << 20)))

    if num_partials > 1:
        total_steps = grid_k
        spp = pl.cdiv(total_steps, num_partials)

        def x_index(p, k):
            gs = p * spp + k
            # Clamp overhang steps to a valid block; the kernel skips them.
            return (0, jnp.minimum(gs, total_steps - 1))

        kernel = functools.partial(
            _partial_gram_kernel, m_total=M, tk=tk,
            steps_per_partial=spp, total_steps=total_steps)

        partials = pl.pallas_call(
            kernel,
            out_shape=jax.ShapeDtypeStruct((num_partials, N, N), jnp.float32),
            grid_spec=pltpu.PrefetchScalarGridSpec(
                num_scalar_prefetch=0,
                grid=(num_partials, spp),
                in_specs=[pl.BlockSpec((N, tk), x_index)],
                # Output block doubles as the per-partial accumulator.
                out_specs=pl.BlockSpec((None, N, N), lambda p, k: (p, 0, 0)),
            ),
            compiler_params=pltpu.CompilerParams(
                dimension_semantics=("parallel", "arbitrary"),
                vmem_limit_bytes=vmem_limit,
            ),
        )(input_feature)
        gram = jnp.sum(partials, axis=0) * (1.0 / float(M))
        return jnp.mean((gram - target_feature.astype(jnp.float32)) ** 2)

    kernel = functools.partial(
        _style_loss_kernel, m_total=M, n_rows=N, tk=tk, ragged=ragged)

    out = pl.pallas_call(
        kernel,
        out_shape=jax.ShapeDtypeStruct((1, 1), jnp.float32),
        grid_spec=pltpu.PrefetchScalarGridSpec(
            num_scalar_prefetch=0,
            grid=(grid_k,),
            in_specs=[
                # Input tile: all N rows, tk columns, slides along K.
                pl.BlockSpec((N, tk), lambda k: (0, k)),
                # Target: whole matrix, resident (constant index_map).
                pl.BlockSpec((N, N), lambda k: (0, 0)),
            ],
            # Scalar loss goes to SMEM (no lane-masked (1,1) VMEM store).
            out_specs=pl.BlockSpec(memory_space=pltpu.MemorySpace.SMEM),
            scratch_shapes=[pltpu.VMEM((N, N), jnp.float32)],
        ),
        compiler_params=pltpu.CompilerParams(
            dimension_semantics=("arbitrary",),  # K is a reduction axis
            vmem_limit_bytes=vmem_limit,
        ),
    )(input_feature, target_feature)
    return out[0, 0]


def style_loss_ref(input_feature, target_feature):
    gram = (input_feature @ input_feature.T) / input_feature.shape[1]
    return jnp.mean((gram - target_feature) ** 2)


if __name__ == "__main__":
    key = jax.random.PRNGKey(0)
    k1, k2 = jax.random.split(key)

    # Small shapes: 32 feature maps, 300 flattened spatial samples (ragged M,
    # exercising the non-divisible tiling path).
    N, M = 32, 300
    input_feature = jax.random.normal(k1, (N, M), dtype=jnp.float32)
    # Deterministic synthetic target gram (plays the role of the stored
    # target_feature from __init__).
    tgt_src = jax.random.normal(k2, (N, M), dtype=jnp.float32)
    target_feature = (tgt_src @ tgt_src.T) / M

    ref = style_loss_ref(input_feature, target_feature)

    # Auto-sized K tile (single grid step at these shapes).
    loss = style_loss(input_feature, target_feature)
    jax.block_until_ready(loss)
    assert jnp.allclose(loss, ref, rtol=1e-4, atol=1e-5), (loss, ref)

    # Forced small tile: multi-step accumulation + gated ragged last tile.
    loss_small = style_loss(input_feature, target_feature, tk=128)
    jax.block_until_ready(loss_small)
    assert jnp.allclose(loss_small, ref, rtol=1e-4, atol=1e-5), (loss_small, ref)

    # Split K reduction across 2 partials (parallel leading axis + epilogue).
    loss_split = style_loss(input_feature, target_feature, tk=128, num_partials=2)
    jax.block_until_ready(loss_split)
    assert jnp.allclose(loss_split, ref, rtol=1e-4, atol=1e-5), (loss_split, ref)

    print("KERNEL_OK")
</pallas_src>

<mosaic_0001>
module attributes {stable_mosaic.version = 11 : i64} {
  func.func @_style_loss_kernel(%arg0: i32, %arg1: memref<32x384xf32, #tpu.memory_space<vmem>>, %arg2: memref<32x32xf32, #tpu.memory_space<vmem>>, %arg3: memref<1x1xf32, #tpu.memory_space<smem>>, %arg4: memref<32x32xf32, #tpu.memory_space<vmem>>) attributes {dimension_semantics = [#tpu.dimension_semantics<arbitrary>], iteration_bounds = array<i64: 1>, scalar_prefetch = 0 : i64, scratch_operands = 1 : i64, tpu.core_type = #tpu.core_type<tc>, window_params = [{transform_indices = @transform_0, window_bounds = array<i64: 32, 384>}, {pipeline_mode = #tpu.pipeline_mode<synchronous>, transform_indices = @transform_1, window_bounds = array<i64: 32, 32>}, {transform_indices = @transform_2, window_bounds = array<i64: 1, 1>}]} {
    %c0_i32 = arith.constant 0 : i32
    %0 = arith.cmpi eq, %arg0, %c0_i32 : i32
    %1 = arith.extui %0 : i1 to i32
    %c0_i32_0 = arith.constant 0 : i32
    %2 = arith.cmpi ne, %1, %c0_i32_0 : i32
    scf.if %2 {
      %cst = arith.constant 0.000000e+00 : f32
      %12 = vector.broadcast %cst : f32 to vector<32x32xf32>
      %c0 = arith.constant 0 : index
      %c0_7 = arith.constant 0 : index
      %13 = vector.load %arg4[%c0, %c0_7] : memref<32x32xf32, #tpu.memory_space<vmem>>, vector<32x32xf32>
      tpu.vector_store %arg4[%c0, %c0_7], %12 {strides = array<i32>} : memref<32x32xf32, #tpu.memory_space<vmem>>, vector<32x32xf32>,
    } else {
    }
    %c0_i32_1 = arith.constant 0 : i32
    %3 = arith.cmpi ne, %arg0, %c0_i32_1 : i32
    %4 = arith.extui %3 : i1 to i32
    %c0_i32_2 = arith.constant 0 : i32
    %5 = arith.cmpi ne, %4, %c0_i32_2 : i32
    scf.if %5 {
      %c0 = arith.constant 0 : index
      %c0_7 = arith.constant 0 : index
      %12 = vector.load %arg1[%c0, %c0_7] : memref<32x384xf32, #tpu.memory_space<vmem>>, vector<32x384xf32>
      %c0_8 = arith.constant 0 : index
      %c0_9 = arith.constant 0 : index
      %13 = vector.load %arg4[%c0_8, %c0_9] : memref<32x32xf32, #tpu.memory_space<vmem>>, vector<32x32xf32>
      %cst = arith.constant dense<0.000000e+00> : vector<32x32xf32>
      %14 = tpu.matmul %12, %12, %cst {dimension_numbers = #tpu.dot_dimension_numbers<[1], [1], [0], [0], [0, 0, 1, 0], [], []>} : vector<32x384xf32>, vector<32x384xf32>, vector<32x32xf32> -> vector<32x32xf32>
      %15 = arith.addf %13, %14 : vector<32x32xf32>
      %c0_10 = arith.constant 0 : index
      %c0_11 = arith.constant 0 : index
      %16 = vector.load %arg4[%c0_10, %c0_11] : memref<32x32xf32, #tpu.memory_space<vmem>>, vector<32x32xf32>
      tpu.vector_store %arg4[%c0_10, %c0_11], %15 {strides = array<i32>} : memref<32x32xf32, #tpu.memory_space<vmem>>, vector<32x32xf32>,
    } else {
    }
    %c0_i32_3 = arith.constant 0 : i32
    %6 = arith.cmpi eq, %arg0, %c0_i32_3 : i32
    %7 = arith.extui %6 : i1 to i32
    %c0_i32_4 = arith.constant 0 : i32
    %8 = arith.cmpi ne, %7, %c0_i32_4 : i32
    scf.if %8 {
      %c0 = arith.constant 0 : index
      %c0_7 = arith.constant 0 : index
      %12 = vector.load %arg1[%c0, %c0_7] : memref<32x384xf32, #tpu.memory_space<vmem>>, vector<32x384xf32>
      %13 = tpu.iota {dimensions = array<i32: 1>} : vector<32x384xi32>
      %c384_i32 = arith.constant 384 : i32
      %14 = arith.muli %arg0, %c384_i32 : i32
      %15 = vector.broadcast %14 : i32 to vector<32x384xi32>
      %16 = arith.addi %15, %13 : vector<32x384xi32>
      %c300_i32 = arith.constant 300 : i32
      %17 = vector.broadcast %c300_i32 : i32 to vector<32x384xi32>
      %18 = arith.cmpi slt, %16, %17 : vector<32x384xi32>
      %cst = arith.constant 0.000000e+00 : f32
      %19 = vector.broadcast %cst : f32 to vector<32x384xf32>
      %20 = arith.select %18, %12, %19 : vector<32x384xi1>, vector<32x384xf32>
      %c0_8 = arith.constant 0 : index
      %c0_9 = arith.constant 0 : index
      %21 = vector.load %arg4[%c0_8, %c0_9] : memref<32x32xf32, #tpu.memory_space<vmem>>, vector<32x32xf32>
      %cst_10 = arith.constant dense<0.000000e+00> : vector<32x32xf32>
      %22 = tpu.matmul %20, %20, %cst_10 {dimension_numbers = #tpu.dot_dimension_numbers<[1], [1], [0], [0], [0, 0, 1, 0], [], []>} : vector<32x384xf32>, vector<32x384xf32>, vector<32x32xf32> -> vector<32x32xf32>
      %23 = arith.addf %21, %22 : vector<32x32xf32>
      %c0_11 = arith.constant 0 : index
      %c0_12 = arith.constant 0 : index
      %24 = vector.load %arg4[%c0_11, %c0_12] : memref<32x32xf32, #tpu.memory_space<vmem>>, vector<32x32xf32>
      tpu.vector_store %arg4[%c0_11, %c0_12], %23 {strides = array<i32>} : memref<32x32xf32, #tpu.memory_space<vmem>>, vector<32x32xf32>,
    } else {
    }
    %c0_i32_5 = arith.constant 0 : i32
    %9 = arith.cmpi eq, %arg0, %c0_i32_5 : i32
    %10 = arith.extui %9 : i1 to i32
    %c0_i32_6 = arith.constant 0 : i32
    %11 = arith.cmpi ne, %10, %c0_i32_6 : i32
    scf.if %11 {
      %c0 = arith.constant 0 : index
      %c0_7 = arith.constant 0 : index
      %12 = vector.load %arg4[%c0, %c0_7] : memref<32x32xf32, #tpu.memory_space<vmem>>, vector<32x32xf32>
      %cst = arith.constant 0.00333333341 : f32
      %13 = vector.broadcast %cst : f32 to vector<32x32xf32>
      %14 = arith.mulf %12, %13 : vector<32x32xf32>
      %c0_8 = arith.constant 0 : index
      %c0_9 = arith.constant 0 : index
      %15 = vector.load %arg2[%c0_8, %c0_9] : memref<32x32xf32, #tpu.memory_space<vmem>>, vector<32x32xf32>
      %16 = arith.subf %14, %15 : vector<32x32xf32>
      %17 = arith.mulf %16, %16 : vector<32x32xf32>
      %18 = vector.shape_cast %17 : vector<32x32xf32> to vector<1x32x32xf32>
      %cst_10 = arith.constant dense<0.000000e+00> : vector<1xf32>
      %19 = vector.multi_reduction <add>, %18, %cst_10 [1, 2] : vector<1x32x32xf32> to vector<1xf32>
      %20 = vector.shape_cast %19 : vector<1xf32> to vector<1x1x1xf32>
      %21 = vector.extract %20[0, 0, 0] : f32 from vector<1x1x1xf32>
      %cst_11 = arith.constant 9.765625E-4 : f32
      %22 = arith.mulf %21, %cst_11 : f32
      %c0_12 = arith.constant 0 : index
      %c0_13 = arith.constant 0 : index
      %23 = memref.load %arg3[%c0_12, %c0_13] : memref<1x1xf32, #tpu.memory_space<smem>>
      memref.store %22, %arg3[%c0_12, %c0_13] : memref<1x1xf32, #tpu.memory_space<smem>>
    } else {
    }
    return
  }
  func.func @transform_0(%arg0: i32) -> (i32, i32) {
    %c0_i32 = arith.constant 0 : i32
    %c0_i32_0 = arith.constant 0 : i32
    return %c0_i32, %arg0 : i32, i32
  }
  func.func @transform_1(%arg0: i32) -> (i32, i32) {
    %c0_i32 = arith.constant 0 : i32
    %c0_i32_0 = arith.constant 0 : i32
    %c0_i32_1 = arith.constant 0 : i32
    return %c0_i32, %c0_i32_0 : i32, i32
  }
  func.func @transform_2(%arg0: i32) -> (i32, i32) {
    %c0_i32 = arith.constant 0 : i32
    %c0_i32_0 = arith.constant 0 : i32
    %c0_i32_1 = arith.constant 0 : i32
    return %c0_i32, %c0_i32_0 : i32, i32
  }
}

</mosaic_0001>

<bundles_post_ra>
// kernel: tpu_custom_call.1
= control target key start
LH: loop header
LB: loop body
LE: loop exit
PB: predicated region body
PF: predicated region fallthrough
CT: control target
= control target key end

     0   :  { %7 = vsyncpa [#allocation4], 0  ;;  %s733_s0 = inlined_call_operand.hbm [shape: f32[32,300], index: 0, kind: input, shape index: {}]   ;;  %s734_s1 = inlined_call_operand.hbm [shape: f32[32,32], index: 1, kind: input, shape index: {}]   ;;  %s735_s2 = inlined_call_operand.hbm [shape: f32[1,1], index: 2, kind: output, shape index: {}]  }
   0x1   :  { %8 = vsyncpa [#allocation7], 0 }
   0x2   :  { %9 = vsyncpa [#allocation5], 0  ;;  %s644_s9 = smov [#allocation3]   ;;  %s584_s13 = scalar_lea.hbm %s733_s0, 1536 }
   0x3   :  { %s15_s10 = sshll.u32 %s644_s9, 4  ;;  %p585_p0 = scmp.ne.s32.totalorder %s733_s0, %s584_s13  ;;  %s16_s10 = int_to_ptr.vmem [resolvable:$true] %s15_s10 }
   0x4   :  { %p588_p1 = scmp.lt.u32.totalorder %s584_s13, %s733_s0 }
   0x6   :  { %p590_p2 = pnand %p588_p1, %p585_p0 }
   0x8   :  { %593 = shalt.err (!%p590_p2)
}
   0x9   :  { %s594_s18 = scalar_lea.vmem %s16_s10, 1536  ;;  %p599_p4 = scmp.lt.s32.totalorder %s16_s10, %s16_s10 }
   0xa   :  { %p595_p3 = scmp.ne.s32.totalorder %s16_s10, %s594_s18  ;;  %p600_p5 = scmp.lt.s32.totalorder %s594_s18, %s594_s18 }
   0xc   :  { %p601_p6 = por %p600_p5, %p599_p4 }
   0xe   :  { %p602_p7 = pnand %p601_p6, %p595_p3 }
  0x10   :  { %605 = shalt.err (!%p602_p7)
}
  0x11   :  { %s645_s19 = smov 384   ;;  %s646_s20 = smov 24  }
  0x12   :  { %21 = dma.hbm_to_vmem [thread:$0]  %s733_s0, 1536, %s16_s10, [#allocation4], %s645_s19, %s645_s19, %s646_s20  }
  0x13   :  { %s647_s23 = smov [#allocation6]   ;;  %s606_s27 = scalar_lea.hbm %s734_s1, 512 }
  0x14   :  { %s27_s24 = sshll.u32 %s647_s23, 4  ;;  %p607_p8 = scmp.ne.s32.totalorder %s734_s1, %s606_s27  ;;  %s28_s24 = int_to_ptr.vmem [resolvable:$true] %s27_s24 }
  0x15   :  { %p610_p9 = scmp.lt.u32.totalorder %s606_s27, %s734_s1 }
  0x17   :  { %p612_p10 = pnand %p610_p9, %p607_p8 }
  0x19   :  { %615 = shalt.err (!%p612_p10)
}
  0x1a   :  { %s616_s4 = scalar_lea.vmem %s28_s24, 512  ;;  %p621_p12 = scmp.lt.s32.totalorder %s28_s24, %s28_s24 }
  0x1b   :  { %p617_p11 = scmp.ne.s32.totalorder %s28_s24, %s616_s4  ;;  %p622_p13 = scmp.lt.s32.totalorder %s616_s4, %s616_s4 }
  0x1d   :  { %p623_p0 = por %p622_p13, %p621_p12 }
  0x1f   :  { %p624_p1 = pnand %p623_p0, %p617_p11 }
  0x21   :  { %627 = shalt.err (!%p624_p1)
}
  0x22   :  { %s648_s0 = smov 128   ;;  %s649_s5 = smov 8  }
  0x23   :  { %33 = dma.hbm_to_vmem [thread:$0]  %s734_s1, 512, %s28_s24, [#allocation7], %s648_s0, %s648_s0, %s649_s5  }
  0x24   :  { %638 = dma.done.wait [#allocation4], 1536  }
  0x25   :  { %639 = vsyncadd [#allocation4], 4294965760 }
  0x26   :  { %640 = dma.done.wait [#allocation7], 512  }
  0x27   :  { %641 = vsyncadd [#allocation7], 4294966784  ;;  %v263_v0 = vlaneseq  ;;  %v252_v3 = vld [vmem:[#allocation3 + $0x8] sm:$0xff]  ;;  %v255_v4 = vld [vmem:[#allocation3 + $0x20] sm:$0xff]  ;;  %vm44_vm2 = vcmask 261120   ;;  %v650_v22 = vmov 0.0  }
  0x28   :  { %v253_v5 = vld [vmem:[#allocation3 + $0x10] sm:$0xff]  ;;  %v554_v6 = vpack.c.bf16 %v255_v4, %v252_v3  ;;  %v256_v7 = vld [vmem:[#allocation3 + $0x28] sm:$0xff]  ;;  %v251_v9 = vld [vmem:[#allocation3] sm:$0xff]  ;;  %355 = vmatprep.mubr.f32.mxu0 %v252_v3  ;;  %45 = vst.msk [vmem:[#allocation2] sm:$0xff] %vm44_vm2, %v650_v22  ;;  %s628_s11 = scalar_lea.hbm %s735_s2, 16 }
  0x29   :  { %v264_v1 = vand.u32 127, %v263_v0  ;;  %v562_v10 = vpack.c.bf16 %v256_v7, %v253_v5  ;;  %v254_v11 = vld [vmem:[#allocation3 + $0x18] sm:$0xff]  ;;  %v261_v13 = vld [vmem:[#allocation3 + $0x50] sm:$0xff]  ;;  %v259_v16 = vld [vmem:[#allocation3 + $0x40] sm:$0xff]  ;;  %46 = vst.msk [vmem:[#allocation2 + $0x8] sm:$0xff] %vm44_vm2, %v650_v22  ;;  %p629_p2 = scmp.ne.s32.totalorder %s735_s2, %s628_s11  ;;  %p632_p3 = scmp.lt.u32.totalorder %s628_s11, %s735_s2 }
  0x2a   :  { %v258_v12 = vld [vmem:[#allocation3 + $0x38] sm:$0xff]  ;;  %555 = vmatprep.subr.bf16.mxu0 %v554_v6  ;;  %v556_v14 = vpack.c.bf16 %v254_v11, %v251_v9  ;;  %v257_v19 = vld [vmem:[#allocation3 + $0x30] sm:$0xff]  ;;  %v260_v20 = vld [vmem:[#allocation3 + $0x48] sm:$0xff]  ;;  %47 = vst.msk [vmem:[#allocation2 + $0x10] sm:$0xff] %vm44_vm2, %v650_v22 }
  0x2b   :  { %v266_v2 = vadd.s32 256, %v264_v1  ;;  %v558_v15 = vpack.c.bf16 %v261_v13, %v258_v12  ;;  %v262_v17 = vld [vmem:[#allocation3 + $0x58] sm:$0xff]  ;;  %v560_v21 = vpack.c.bf16 %v260_v20, %v257_v19  ;;  %48 = vst.msk [vmem:[#allocation2 + $0x18] sm:$0xff] %vm44_vm2, %v650_v22  ;;  %v478_v50 = vld [vmem:[#allocation6] sm:$0xff]  ;;  %v479_v51 = vld [vmem:[#allocation6 + $0x8] sm:$0xff]  ;;  %p634_p4 = pnand %p632_p3, %p629_p2 }
  0x2c   :  { %v568_v18 = vpack.c.bf16 %v262_v17, %v259_v16  ;;  %557 = vmatpush1.bf16.xpose.msra.mxu0 %v556_v14  ;;  %v480_v56 = vld [vmem:[#allocation6 + $0x10] sm:$0xff]  ;;  %v481_v62 = vld [vmem:[#allocation6 + $0x18] sm:$0xff] }
  0x2d   :  { %vm274_vm0 = vcmp.lt.s32.totalorder %v266_v2, 300  ;;  %559 = vmatprep.subr.bf16.mxu0 %v558_v15 }
  0x2e   :  { %vm693_vm1 = vmpackc.low %vm274_vm0, %vm274_vm0  ;;  %548 = vmatprep.mubr.msk.f32.mxu1 %vm274_vm0, %v253_v5 }
  0x2f   :  { %564 = vmatprep.subr.msk.bf16.mxu1 %vm693_vm1, %v562_v10  ;;  %v287_v26 = vld [vmem:[#allocation2] sm:$0xff] }
  0x30   :  { %567 = vmatpush3.bf16.xpose.msk.msra.mxu1 %vm693_vm1, %v562_v10  ;;  %v288_v30 = vld [vmem:[#allocation2 + $0x8] sm:$0xff] }
  0x31   :  { %570 = vmatprep.subr.msk.bf16.mxu1 %vm693_vm1, %v568_v18  ;;  %v289_v38 = vld [vmem:[#allocation2 + $0x10] sm:$0xff] }
  0x32   :  { %v290_v42 = vld [vmem:[#allocation2 + $0x18] sm:$0xff] }
  0x34   :  { %561 = vmatpush1.bf16.xpose.msra.mxu0 %v560_v21 }
  0x38   :  { %573 = vmatpush3.bf16.xpose.msk.msra.mxu1 %vm693_vm1, %v568_v18 }
  0x3b   :  { %356 = vmatmul.mubr.f32.vlgmr.msra.gmra.mrb[0].mxu0 %v251_v9 }
  0x3c   :  { %360 = vmatprep.mubr.f32.mxu0 %v255_v4 }
  0x3f   :  { %549 = vmatmul.mubr.msk.f32.vlgmr.msra.gmra.mrb[0].mxu1 %vm274_vm0, %v256_v7  ;;  %361 = vmatmul.mubr.f32.gmra.mrb[2].mxu0 %v254_v11 }
  0x40   :  { %551 = vmatprep.mubr.msk.f32.mxu1 %vm274_vm0, %v259_v16  ;;  %365 = vmatprep.mubr.f32.mxu0 %v258_v12 }
  0x43   :  { %552 = vmatmul.mubr.msk.f32.gmra.mrb[2].mxu1 %vm274_vm0, %v262_v17  ;;  %366 = vmatmul.mubr.f32.gmra.mrb[4].mxu0 %v257_v19 }
  0x44   :  { %370 = vmatprep.mubr.f32.mxu0 %v261_v13 }
  0x47   :  { %371 = vmatmul.mubr.f32.gmra.mrb[6].mxu0 %v260_v20 }
 0x10e   :  { %v357_v23 = vpop.f32.mrb[0].mxu0 }
 0x10f   :  { %v359_v25 = vpop.f32.mrb[1].mxu0 }
 0x112   :  { %v550_v24 = vpop.f32.mrb[0].mxu1  ;;  %v362_v31 = vpop.f32.mrb[2].mxu0 }
 0x113   :  { %v442_v27 = vpop.f32.mrb[1].mxu1  ;;  %v448_v33 = vadd.f32 %v550_v24, %v362_v31  ;;  %v364_v34 = vpop.f32.mrb[3].mxu0 }
 0x114   :  { %v443_v28 = vadd.f32 %v442_v27, %v357_v23 }
 0x115   :  { %v462_v36 = vadd.f32 %v448_v33, %v288_v30 }
 0x116   :  { %v461_v29 = vadd.f32 %v443_v28, %v287_v26  ;;  %v553_v32 = vpop.f32.mrb[2].mxu1  ;;  %v367_v37 = vpop.f32.mrb[4].mxu0 }
 0x117   :  { %v452_v35 = vpop.f32.mrb[3].mxu1  ;;  %467 = vst.msk [vmem:[#allocation2 + $0x8] sm:$0xff] %vm44_vm2, %v462_v36  ;;  %v369_v40 = vpop.f32.mrb[5].mxu0 }
 0x118   :  { %466 = vst.msk [vmem:[#allocation2] sm:$0xff] %vm44_vm2, %v461_v29  ;;  %v453_v39 = vadd.f32 %v452_v35, %v367_v37 }
 0x11a   :  { %v463_v41 = vadd.f32 %v453_v39, %v289_v38  ;;  %v372_v43 = vpop.f32.mrb[6].mxu0 }
 0x11b   :  { %v458_v44 = vadd.f32 %v553_v32, %v372_v43  ;;  %v374_v45 = vpop.f32.mrb[7].mxu0 }
 0x11c   :  { %468 = vst.msk [vmem:[#allocation2 + $0x10] sm:$0xff] %vm44_vm2, %v463_v41 }
 0x11d   :  { %v464_v47 = vadd.f32 %v458_v44, %v290_v42 }
 0x11e   :  { %v471_v49 = vld [vmem:[#allocation2 + $0x8] sm:$0xff] }
 0x11f   :  { %v470_v46 = vld [vmem:[#allocation2] sm:$0xff]  ;;  %469 = vst.msk [vmem:[#allocation2 + $0x18] sm:$0xff] %vm44_vm2, %v464_v47  ;;  %v475_v52 = vmul.f32 0.0033333334, %v471_v49 }
 0x120   :  { %v474_v48 = vmul.f32 0.0033333334, %v470_v46 }
 0x121   :  { %v483_v54 = vsub.f32 %v475_v52, %v479_v51 }
 0x122   :  { %v482_v53 = vsub.f32 %v474_v48, %v478_v50 }
 0x123   :  { %v472_v55 = vld [vmem:[#allocation2 + $0x10] sm:$0xff]  ;;  %v487_v58 = vmul.f32 %v483_v54, %v483_v54 }
 0x124   :  { %v476_v57 = vmul.f32 0.0033333334, %v472_v55  ;;  %v486_v60 = vmul.f32 %v482_v53, %v482_v53 }
 0x125   :  { %v491_v1 = vsel %vm44_vm2, %v487_v58, 0.0 }
 0x126   :  { %v484_v59 = vsub.f32 %v476_v57, %v480_v56  ;;  %v473_v61 = vld [vmem:[#allocation2 + $0x18] sm:$0xff]  ;;  %v490_v3 = vsel %vm44_vm2, %v486_v60, 0.0 }
 0x127   :  { %v477_v63 = vmul.f32 0.0033333334, %v473_v61  ;;  %v492_v5 = vadd.f32 %v491_v1, %v490_v3 }
 0x128   :  { %v488_v0 = vmul.f32 %v484_v59, %v484_v59 }
 0x129   :  { %v485_v2 = vsub.f32 %v477_v63, %v481_v62 }
 0x12a   :  { %v493_v4 = vsel %vm44_vm2, %v488_v0, 0.0 }
 0x12b   :  { %v489_v6 = vmul.f32 %v485_v2, %v485_v2  ;;  %v494_v7 = vadd.f32 %v493_v4, %v492_v5 }
 0x12d   :  { %v495_v8 = vsel %vm44_vm2, %v489_v6, 0.0 }
 0x12e   :  { %v496_v9 = vadd.f32 %v495_v8, %v494_v7 }
 0x130   :  { %497 = vadd.xlane.f32.xlu0 %v496_v9 }
 0x1bd   :  { %v498_v10 = vpop.xlane.xlu0 %497 }
 0x1be   :  { %v499_v11 = vrot.slane %v498_v10, 4 }
 0x1c0   :  { %v500_v12 = vadd.f32 %v499_v11, %v498_v10 }
 0x1c2   :  { %v501_v13 = vrot.slane %v500_v12, 2 }
 0x1c4   :  { %v502_v14 = vadd.f32 %v501_v13, %v500_v12 }
 0x1c6   :  { %v503_v15 = vrot.slane %v502_v14, 1 }
 0x1c8   :  { %v504_v16 = vadd.f32 %v503_v15, %v502_v14 }
 0x1ca   :  { %574 = vpush %v504_v16 }
 0x1fb   :  { %s575_s1 = spop %574 }
 0x1fc   :  { %s506_s8 = smul.f32 0.0009765625, %s575_s1 }
 0x1fe   :  { %508 = sst [smem:[#allocation8]] %s506_s8 }
 0x1ff   :  { %637 = shalt.err (!%p634_p4)
}
 0x200   :  { %s651_s16 = smov [#allocation8]  }
 0x201   :  { %516 = dma.smem_to_hbm %s651_s16, 16, %s735_s2, [#allocation5]  }
 0x202   :  { %642 = dma.done.wait [#allocation5], 16  }
 0x203   :  { %643 = vsyncadd [#allocation5], 4294967280 }
 0x204   :  { %520 = sfence }
 0x205   :  { %521 = vsyncpa [#allocation4], 1 }
 0x206   :  { %522 = vsyncpa [#allocation7], 1 }
 0x207   :  { %523 = vsyncpa [#allocation5], 1 }

</bundles_post_ra>
